<compile_context>
chip_gen: v5e
topology: v5e:2x2
jax: 0.10.0
libtpu: 0.0.40
codegen_flags: <defaults>
</compile_context>

<pallas_src>
import jax
import jax.numpy as jnp
from jax.experimental import pallas as pl
from jax.experimental.pallas import tpu as pltpu

_LANE = 128        # TPU vreg lane width
_ROW_TILE = 1024   # fallback copy tile: 512 KiB f32 per buffer, VMEM-safe even on v7x
_AXIS = 3          # Model.axis


# ---------------------------------------------------------------------------
# Primary path: zero-byte aliased pass-through (no DMA, no VMEM residency).
# ---------------------------------------------------------------------------
def _touch_kernel(x_ref, o_ref):
    # Output aliases the input HBM buffer, so no data movement is required.
    # touch() installs a fake read+write dependency so the aliased output is
    # considered produced and nothing is dead-code-eliminated.
    pltpu.touch(o_ref)


def _alias_passthrough(x):
    return pl.pallas_call(
        _touch_kernel,
        out_shape=jax.ShapeDtypeStruct(x.shape, x.dtype),
        in_specs=[pl.BlockSpec(memory_space=pl.ANY)],   # raw HBM ref, no auto-DMA
        out_specs=pl.BlockSpec(memory_space=pl.ANY),
        input_output_aliases={0: 0},                    # output == input buffer
        compiler_params=pltpu.CompilerParams(has_side_effects=True),
    )(x)


# ---------------------------------------------------------------------------
# Fallback path (only used if the zero-copy path fails to lower/run): a
# lane-dense, tiled, software-pipelined identity copy at HBM roofline.
# ---------------------------------------------------------------------------
def _copy_kernel(x_ref, o_ref):
    o_ref[...] = x_ref[...]


def _tiled_copy(x):
    total = x.size
    if total > 0 and total % _LANE == 0:
        rows = total // _LANE
        x2 = x.reshape(rows, _LANE)
        # Single full-extent block for small payloads (always a legal block
        # shape); otherwise 1024-row tiles with a cdiv grid — Pallas masks the
        # partial last block, so no divisor search is needed.
        tile = rows if rows <= _ROW_TILE else _ROW_TILE
        out = pl.pallas_call(
            _copy_kernel,
            out_shape=jax.ShapeDtypeStruct((rows, _LANE), x.dtype),
            grid=(pl.cdiv(rows, tile),),
            in_specs=[pl.BlockSpec((tile, _LANE), lambda i: (i, 0))],
            out_specs=pl.BlockSpec((tile, _LANE), lambda i: (i, 0)),
            compiler_params=pltpu.CompilerParams(
                dimension_semantics=("parallel",)),
        )(x2)
        return out.reshape(x.shape)
    # Non-lane-divisible payloads are tiny in this model's tests; a single
    # whole-array VMEM copy is acceptable here.
    return pl.pallas_call(
        _copy_kernel,
        out_shape=jax.ShapeDtypeStruct(x.shape, x.dtype),
        in_specs=[pl.BlockSpec(memory_space=pltpu.MemorySpace.VMEM)],
        out_specs=pl.BlockSpec(memory_space=pltpu.MemorySpace.VMEM),
    )(x)


_ZERO_COPY_OK = None  # cached result of the one-time lowering probe


def _payload_passthrough(x):
    global _ZERO_COPY_OK
    if _ZERO_COPY_OK is None:
        try:
            out = _alias_passthrough(x)
            jax.block_until_ready(out)
            _ZERO_COPY_OK = True
            return out
        except Exception:  # zero-copy path unavailable on this toolchain
            _ZERO_COPY_OK = False
    if _ZERO_COPY_OK:
        return _alias_passthrough(x)
    return _tiled_copy(x)


# ---------------------------------------------------------------------------
# Model.forward equivalent.
# ---------------------------------------------------------------------------
def unsqueeze_like(x, scalar):
    """Mirrors Model.forward(x, scalar) with axis=3."""
    if x.ndim < _AXIS:
        raise ValueError(f"unsqueeze axis {_AXIS} requires ndim >= {_AXIS}, got {x.ndim}")

    x_pass = _payload_passthrough(x)

    # torch.unsqueeze(x, 3): metadata-only reshape (insert size-1 axis at 3).
    x_out = x_pass.reshape(x.shape[:_AXIS] + (1,) + x.shape[_AXIS:])

    # torch.unsqueeze(torch.tensor(scalar), 0): metadata-only; dtype follows
    # the Python scalar (float -> f32, int -> i32 under JAX defaults).
    y = jnp.asarray(scalar).reshape(1)
    return x_out, y


if __name__ == "__main__":
    key = jax.random.PRNGKey(0)
    B, C, H, W = 2, 4, 16, 16
    x = jax.random.normal(key, (B, C, H, W), dtype=jnp.float32)
    scalar = 1.5

    x_out, y_out = unsqueeze_like(x, scalar)
    jax.block_until_ready((x_out, y_out))

    # Correctness checks against the reference semantics.
    assert x_out.shape == (B, C, H, 1, W), x_out.shape
    assert y_out.shape == (1,), y_out.shape
    assert jnp.array_equal(x_out, jnp.expand_dims(x, 3)), "tensor payload mismatch"
    assert jnp.allclose(y_out, jnp.array([scalar], dtype=jnp.float32)), "scalar mismatch"

    print("KERNEL_OK")
</pallas_src>

<mosaic_0001>
module attributes {stable_mosaic.version = 11 : i64} {
  func.func @_touch_kernel(%arg0: memref<2x4x16x16xf32, #tpu.memory_space<any>>, %arg1: memref<2x4x16x16xf32, #tpu.memory_space<any>>) attributes {dimension_semantics = [], scalar_prefetch = 0 : i64, scratch_operands = 0 : i64, tpu.core_type = #tpu.core_type<tc>} {
    return
  }
}

module attributes {stable_mosaic.version = 11 : i64} {
  func.func @_copy_kernel(%arg0: i32, %arg1: memref<16x128xf32, #tpu.memory_space<vmem>>, %arg2: memref<16x128xf32, #tpu.memory_space<vmem>>) attributes {dimension_semantics = [#tpu.dimension_semantics<parallel>], iteration_bounds = array<i64: 1>, scalar_prefetch = 0 : i64, scratch_operands = 0 : i64, tpu.core_type = #tpu.core_type<tc>, window_params = [{transform_indices = @transform_0, window_bounds = array<i64: 16, 128>}, {transform_indices = @transform_1, window_bounds = array<i64: 16, 128>}]} {
    %c0 = arith.constant 0 : index
    %c0_0 = arith.constant 0 : index
    %0 = vector.load %arg1[%c0, %c0_0] : memref<16x128xf32, #tpu.memory_space<vmem>>, vector<16x128xf32>
    %c0_1 = arith.constant 0 : index
    %c0_2 = arith.constant 0 : index
    %1 = vector.load %arg2[%c0_1, %c0_2] : memref<16x128xf32, #tpu.memory_space<vmem>>, vector<16x128xf32>
    tpu.vector_store %arg2[%c0_1, %c0_2], %0 {strides = array<i32>} : memref<16x128xf32, #tpu.memory_space<vmem>>, vector<16x128xf32>,
    return
  }
  func.func @transform_0(%arg0: i32) -> (i32, i32) {
    %c0_i32 = arith.constant 0 : i32
    %c0_i32_0 = arith.constant 0 : i32
    return %arg0, %c0_i32 : i32, i32
  }
  func.func @transform_1(%arg0: i32) -> (i32, i32) {
    %c0_i32 = arith.constant 0 : i32
    %c0_i32_0 = arith.constant 0 : i32
    return %arg0, %c0_i32 : i32, i32
  }
}

</mosaic_0001>

<bundles_post_ra>
// kernel: tpu_custom_call.1
= control target key start
LH: loop header
LB: loop body
LE: loop exit
PB: predicated region body
PF: predicated region fallthrough
CT: control target
= control target key end

     0   :  { %s16_s0 = inlined_call_operand.hbm [shape: f32[2,4,16,16], index: 0, kind: input, shape index: {}, may-alias: {0,1}]   ;;  %s17_s1 = inlined_call_operand.hbm [shape: f32[2,4,16,16], index: 1, kind: output, shape index: {}, may-alias: {0,1}]  }

// kernel: tpu_custom_call.1
= control target key start
LH: loop header
LB: loop body
LE: loop exit
PB: predicated region body
PF: predicated region fallthrough
CT: control target
= control target key end

     0   :  { %6 = vsyncpa [#allocation3], 0  ;;  %s124_s0 = inlined_call_operand.hbm [shape: f32[16,128], index: 0, kind: input, shape index: {}]   ;;  %s125_s1 = inlined_call_operand.hbm [shape: f32[16,128], index: 1, kind: output, shape index: {}]  }
   0x1   :  { %7 = vsyncpa [#allocation4], 0  ;;  %s12_s8 = sshll.u32 %s124_s0, 4  ;;  %s104_s9 = smov [#allocation2]   ;;  %s13_s8 = int_to_ptr.hbm [resolvable:$true] %s12_s8 }
   0x2   :  { %s14_s10 = sshll.u32 %s104_s9, 4  ;;  %s105_s11 = smov 128   ;;  %s15_s10 = int_to_ptr.vmem [resolvable:$true] %s14_s10 }
   0x3   :  { %s106_s12 = smov 8  }
   0x4   :  { %20 = dma.hbm_to_vmem [thread:$0]  %s13_s8, 256, %s15_s10, [#allocation3], %s105_s11, %s105_s11, %s106_s12  }
   0x5   :  { %100 = dma.done.wait [#allocation3], 256  }
   0x6   :  { %101 = vsyncadd [#allocation3], 4294967040  ;;  %s107_s13 = smov [#allocation5]   ;;  %s35_s17 = sshll.u32 %s125_s1, 4  ;;  %v25_v0 = vld [vmem:[#allocation2] sm:$0xff]  ;;  %v26_v1 = vld [vmem:[#allocation2 + $0x8] sm:$0xff]  ;;  %s36_s17 = int_to_ptr.hbm [resolvable:$true] %s35_s17 }
   0x7   :  { %s33_s14 = sshll.u32 %s107_s13, 4  ;;  %27 = vst [vmem:[#allocation5] sm:$0xff] %v25_v0  ;;  %s34_s14 = int_to_ptr.vmem [resolvable:$true] %s33_s14 }
   0x8   :  { %28 = vst [vmem:[#allocation5 + $0x8] sm:$0xff] %v26_v1 }
   0x9   :  { %41 = dma.vmem_to_hbm [thread:$0]  %s34_s14, 256, %s36_s17, [#allocation4], %s105_s11, %s105_s11, %s106_s12  }
   0xa   :  { %102 = dma.done.wait [#allocation4], 256  }
   0xb   :  { %103 = vsyncadd [#allocation4], 4294967040 }
   0xc   :  { %46 = vsyncpa [#allocation3], 1 }
   0xd   :  { %47 = vsyncpa [#allocation4], 1 }

</bundles_post_ra>
